<compile_context>
chip_gen: v7x
topology: tpu7x:2x2x1
jax: 0.10.0
libtpu: 0.0.40
codegen_flags: <defaults>
</compile_context>

<pallas_src>
import jax
import jax.numpy as jnp
from jax.experimental import pallas as pl
from jax.experimental.pallas import tpu as pltpu


_LANE = 128                    # lane width; batch-tile / output alignment
_DEFAULT_MAX_TILE = 8192       # per-step batch tile (review: 4096-8192)
_MIN_EVEN_SPLIT_TILE = 2048    # never shrink tiles below this to force even grids
_VMEM_LIMIT_BYTES = 48 * 1024 * 1024


def _round_up(x, m):
    return ((x + m - 1) // m) * m


def _cdiv(a, b):
    return -(-a // b)


def _choose_tiling(B, max_tile):
    """Pick (tile, num_steps): tile a multiple of 128, minimal batch padding.
    Prefers an even number of steps (balanced v7x 2-TC sharding of the
    "parallel" axis) as long as tiles stay >= 2048 (per-step overhead
    amortization on single-TC v5e/v6e)."""
    max_tile = max(_LANE, (int(max_tile) // _LANE) * _LANE)
    if B <= max_tile:
        return _round_up(B, _LANE), 1
    num_steps = _cdiv(B, max_tile)
    if num_steps % 2 == 1:
        even_tile = _round_up(_cdiv(B, num_steps + 1), _LANE)
        if even_tile >= _MIN_EVEN_SPLIT_TILE:
            num_steps += 1
    tile = _round_up(_cdiv(B, num_steps), _LANE)
    return tile, num_steps


def _mlp_kernel(x_ref, w1t_ref, b1_ref, w2t_ref, b2_ref, o_ref):
    # x_ref  : (T, D_in)   f32  streamed batch tile (cast to bf16 on-chip)
    # w1t_ref: (H, D_in)   bf16 resident (W1^T)
    # b1_ref : (H, 1)      f32  resident
    # w2t_ref: (D_out, H)  bf16 resident (W2^T)
    # b2_ref : (D_out, 1)  f32  resident
    # o_ref  : (D_out, T)  f32  lane-dense output block (T % 128 == 0)
    x_bf = x_ref[...].astype(jnp.bfloat16)

    # h_t = W1^T @ x^T: contract BOTH operands on D_in (their last dim) so the
    # MXU consumes x without materializing a transpose.  Hidden units land on
    # sublanes, batch on lanes -> tanh only touches H real rows.
    acc = jax.lax.dot_general(
        w1t_ref[...], x_bf,
        dimension_numbers=(((1,), (1,)), ((), ())),
        preferred_element_type=jnp.float32,
    )                                                 # (H, T) f32
    h = jnp.tanh(acc + b1_ref[...])                   # (H, T) f32

    # logit^T = W2^T @ h_t + b2: standard matmul, output already lane-dense.
    out_t = jax.lax.dot_general(
        w2t_ref[...], h.astype(jnp.bfloat16),
        dimension_numbers=(((1,), (0,)), ((), ())),
        preferred_element_type=jnp.float32,
    ) + b2_ref[...]                                   # (D_out, T) f32
    o_ref[...] = out_t.astype(o_ref.dtype)


def diag_laplace_forward(x, w1, b1, w2, b2, *, tile_b=_DEFAULT_MAX_TILE):
    """DiagLaplace.forward(x): fused forward pass of the wrapped base MLP."""
    B, D_in = x.shape
    H = w1.shape[1]
    D_out = w2.shape[1]
    out_dtype = x.dtype

    tile, num_steps = _choose_tiling(B, tile_b)
    B_pad = tile * num_steps

    # Stream x as-is (no wrapper-side cast pass); only pad the batch when the
    # tile doesn't divide it.  Padded rows produce garbage logits that are
    # sliced away below -- safe because there are no cross-row reductions.
    x_in = x if B_pad == B else jnp.pad(x, ((0, B_pad - B), (0, 0)))

    # Weights/biases are tiny: pre-transpose & cast once, keep VMEM-resident.
    w1t = jnp.asarray(w1).T.astype(jnp.bfloat16)                 # (H, D_in)
    b1c = jnp.asarray(b1).reshape(-1, 1).astype(jnp.float32)     # (H, 1)
    w2t = jnp.asarray(w2).T.astype(jnp.bfloat16)                 # (D_out, H)
    b2c = jnp.asarray(b2).reshape(-1, 1).astype(jnp.float32)     # (D_out, 1)

    out_t = pl.pallas_call(
        _mlp_kernel,
        out_shape=jax.ShapeDtypeStruct((D_out, B_pad), jnp.float32),
        grid=(num_steps,),
        in_specs=[
            pl.BlockSpec((tile, D_in), lambda i: (i, 0)),   # x: tiled over batch
            pl.BlockSpec((H, D_in), lambda i: (0, 0)),      # W1^T: resident
            pl.BlockSpec((H, 1), lambda i: (0, 0)),         # b1:   resident
            pl.BlockSpec((D_out, H), lambda i: (0, 0)),     # W2^T: resident
            pl.BlockSpec((D_out, 1), lambda i: (0, 0)),     # b2:   resident
        ],
        out_specs=pl.BlockSpec((D_out, tile), lambda i: (0, i)),  # lane-dense
        compiler_params=pltpu.CompilerParams(
            dimension_semantics=("parallel",),
            vmem_limit_bytes=_VMEM_LIMIT_BYTES,
        ),
    )(x_in, w1t, b1c, w2t, b2c)

    return out_t[:, :B].T.astype(out_dtype)   # (B, D_out)


def _reference_forward(x, w1, b1, w2, b2):
    h = jnp.tanh(x @ w1 + b1)
    return h @ w2 + b2


if __name__ == "__main__":
    key = jax.random.PRNGKey(0)
    k_x, k_w1, k_b1, k_w2, k_b2 = jax.random.split(key, 5)

    # Small shapes consistent with the module's forward: flat features in,
    # single binary logit out (what forward_linearized / estimate_variance_batch
    # assume when multiclass=False).
    B, D_in, H, D_out = 8, 32, 32, 1

    x = jax.random.normal(k_x, (B, D_in), dtype=jnp.float32)

    # Deterministic synthetic parameters (this is the "base_model" state).
    w1 = jax.random.normal(k_w1, (D_in, H), dtype=jnp.float32) * 0.1
    b1 = jax.random.normal(k_b1, (1, H), dtype=jnp.float32) * 0.1
    w2 = jax.random.normal(k_w2, (H, D_out), dtype=jnp.float32) * 0.1
    b2 = jax.random.normal(k_b2, (1, D_out), dtype=jnp.float32) * 0.1

    out = diag_laplace_forward(x, w1, b1, w2, b2)
    out = jax.block_until_ready(out)

    ref = _reference_forward(x, w1, b1, w2, b2)
    assert out.shape == (B, D_out), out.shape
    # bf16 MXU operands -> slightly looser tolerance than pure f32.
    assert jnp.allclose(out, ref, atol=3e-2, rtol=3e-2), "mismatch vs reference"

    # TODO(synk): estimate_variance_batch / forward_linearized / optimize_var0*
    # (GGN, Hessian inverse, autograd Jacobians, MVN sampling) are
    # Laplace-approximation training utilities, not part of forward(); not
    # implemented as kernels.
    print("KERNEL_OK")
</pallas_src>

<mosaic_0001>
module attributes {stable_mosaic.version = 11 : i64} {
  func.func @_mlp_kernel(%arg0: i32, %arg1: memref<128x32xf32, #tpu.memory_space<vmem>>, %arg2: memref<32x32xbf16, #tpu.memory_space<vmem>>, %arg3: memref<32x1xf32, #tpu.memory_space<vmem>>, %arg4: memref<1x32xbf16, #tpu.memory_space<vmem>>, %arg5: memref<1x1xf32, #tpu.memory_space<vmem>>, %arg6: memref<1x128xf32, #tpu.memory_space<vmem>>) attributes {dimension_semantics = [#tpu.dimension_semantics<parallel>], iteration_bounds = array<i64: 1>, scalar_prefetch = 0 : i64, scratch_operands = 0 : i64, tpu.core_type = #tpu.core_type<tc>, window_params = [{transform_indices = @transform_0, window_bounds = array<i64: 128, 32>}, {pipeline_mode = #tpu.pipeline_mode<synchronous>, transform_indices = @transform_1, window_bounds = array<i64: 32, 32>}, {pipeline_mode = #tpu.pipeline_mode<synchronous>, transform_indices = @transform_2, window_bounds = array<i64: 32, 1>}, {pipeline_mode = #tpu.pipeline_mode<synchronous>, transform_indices = @transform_3, window_bounds = array<i64: 1, 32>}, {pipeline_mode = #tpu.pipeline_mode<synchronous>, transform_indices = @transform_4, window_bounds = array<i64: 1, 1>}, {transform_indices = @transform_5, window_bounds = array<i64: 1, 128>}]} {
    %c0 = arith.constant 0 : index
    %c0_0 = arith.constant 0 : index
    %0 = vector.load %arg1[%c0, %c0_0] : memref<128x32xf32, #tpu.memory_space<vmem>>, vector<128x32xf32>
    %1 = arith.truncf %0 : vector<128x32xf32> to vector<128x32xbf16>
    %c0_1 = arith.constant 0 : index
    %c0_2 = arith.constant 0 : index
    %2 = vector.load %arg2[%c0_1, %c0_2] : memref<32x32xbf16, #tpu.memory_space<vmem>>, vector<32x32xbf16>
    %cst = arith.constant dense<0.000000e+00> : vector<32x128xf32>
    %3 = tpu.matmul %2, %1, %cst {dimension_numbers = #tpu.dot_dimension_numbers<[1], [1], [0], [0], [0, 0, 1, 0], [], []>} : vector<32x32xbf16>, vector<128x32xbf16>, vector<32x128xf32> -> vector<32x128xf32>
    %c0_3 = arith.constant 0 : index
    %c0_4 = arith.constant 0 : index
    %4 = vector.load %arg3[%c0_3, %c0_4] : memref<32x1xf32, #tpu.memory_space<vmem>>, vector<32x1xf32>
    %5 = vector.broadcast %4 : vector<32x1xf32> to vector<32x128xf32>
    %6 = arith.addf %3, %5 : vector<32x128xf32>
    %7 = math.tanh %6 : vector<32x128xf32>
    %c0_5 = arith.constant 0 : index
    %c0_6 = arith.constant 0 : index
    %8 = vector.load %arg4[%c0_5, %c0_6] : memref<1x32xbf16, #tpu.memory_space<vmem>>, vector<1x32xbf16>
    %9 = arith.truncf %7 : vector<32x128xf32> to vector<32x128xbf16>
    %cst_7 = arith.constant dense<0.000000e+00> : vector<1x128xf32>
    %10 = tpu.matmul %8, %9, %cst_7 {dimension_numbers = #tpu.dot_dimension_numbers<[1], [0], [0], [1], [0, 0, 1, 1], [], []>} : vector<1x32xbf16>, vector<32x128xbf16>, vector<1x128xf32> -> vector<1x128xf32>
    %c0_8 = arith.constant 0 : index
    %c0_9 = arith.constant 0 : index
    %11 = vector.load %arg5[%c0_8, %c0_9] : memref<1x1xf32, #tpu.memory_space<vmem>>, vector<1x1xf32>
    %12 = vector.broadcast %11 : vector<1x1xf32> to vector<1x128xf32>
    %13 = arith.addf %10, %12 : vector<1x128xf32>
    %c0_10 = arith.constant 0 : index
    %c0_11 = arith.constant 0 : index
    %14 = vector.load %arg6[%c0_10, %c0_11] : memref<1x128xf32, #tpu.memory_space<vmem>>, vector<1x128xf32>
    tpu.vector_store %arg6[%c0_10, %c0_11], %13 {strides = array<i32>} : memref<1x128xf32, #tpu.memory_space<vmem>>, vector<1x128xf32>,
    return
  }
  func.func @transform_0(%arg0: i32) -> (i32, i32) {
    %c0_i32 = arith.constant 0 : i32
    %c0_i32_0 = arith.constant 0 : i32
    return %arg0, %c0_i32 : i32, i32
  }
  func.func @transform_1(%arg0: i32) -> (i32, i32) {
    %c0_i32 = arith.constant 0 : i32
    %c0_i32_0 = arith.constant 0 : i32
    %c0_i32_1 = arith.constant 0 : i32
    return %c0_i32, %c0_i32_0 : i32, i32
  }
  func.func @transform_2(%arg0: i32) -> (i32, i32) {
    %c0_i32 = arith.constant 0 : i32
    %c0_i32_0 = arith.constant 0 : i32
    %c0_i32_1 = arith.constant 0 : i32
    return %c0_i32, %c0_i32_0 : i32, i32
  }
  func.func @transform_3(%arg0: i32) -> (i32, i32) {
    %c0_i32 = arith.constant 0 : i32
    %c0_i32_0 = arith.constant 0 : i32
    %c0_i32_1 = arith.constant 0 : i32
    return %c0_i32, %c0_i32_0 : i32, i32
  }
  func.func @transform_4(%arg0: i32) -> (i32, i32) {
    %c0_i32 = arith.constant 0 : i32
    %c0_i32_0 = arith.constant 0 : i32
    %c0_i32_1 = arith.constant 0 : i32
    return %c0_i32, %c0_i32_0 : i32, i32
  }
  func.func @transform_5(%arg0: i32) -> (i32, i32) {
    %c0_i32 = arith.constant 0 : i32
    %c0_i32_0 = arith.constant 0 : i32
    return %c0_i32, %arg0 : i32, i32
  }
}

</mosaic_0001>

<bundles_post_ra>
// kernel: tpu_custom_call.1
= control target key start
LH: loop header
LB: loop body
LE: loop exit
PB: predicated region body
PF: predicated region fallthrough
CT: control target
= control target key end

     0   :  { %s472_s0 = inlined_call_operand.vmem [shape: f32[128,32], index: 0, kind: input, shape index: {}]   ;;  %s473_s1 = inlined_call_operand.vmem [shape: bf16[32,32], index: 1, kind: input, shape index: {}]   ;;  %s474_s2 = inlined_call_operand.vmem [shape: f32[32,1], index: 2, kind: input, shape index: {}]   ;;  %s475_s3 = inlined_call_operand.vmem [shape: bf16[1,32], index: 3, kind: input, shape index: {}]   ;;  %s476_s4 = inlined_call_operand.<no memory space> [shape: f32[1,1], index: 4, kind: input, shape index: {}]   ;;  %s477_s5 = inlined_call_operand.hbm [shape: f32[1,128], index: 5, kind: output, shape index: {}]  }
   0x1   :  { %v10_v0 = vstv %s476_s4 }
   0x2   :  { %11 = vst [vmem:[#allocation2] sm:$0x1] %v10_v0 }
   0x3   :  { %v24_v1 = vld [vmem:[%s472_s0] sm:$0xff]  ;;  %v25_v2 = vld [vmem:[%s472_s0 + $0x8] sm:$0xff]  ;;  %vm86_vm0 = vcmask 261120   ;;  %v26_v3 = vld [vmem:[%s472_s0 + $0x10] sm:$0xff]  ;;  %v335_v6 = vmov 0  }
   0x4   :  { %v40_v4 = vpack.c.bf16 %v25_v2, %v24_v1  ;;  %v27_v5 = vld [vmem:[%s472_s0 + $0x18] sm:$0xff]  ;;  %299 = vset.pattern.permute.xlu0 %v335_v6  ;;  %300 = vset.pattern.permute.xlu1 %v335_v6  ;;  %v28_v9 = vld [vmem:[%s472_s0 + $0x20] sm:$0xff]  ;;  %v29_v10 = vld [vmem:[%s472_s0 + $0x28] sm:$0xff] }
   0x5   :  { %v41_v7 = vpack.c.bf16 %v27_v5, %v26_v3  ;;  %v301_v11 = vld [vmem:[%s473_s1] sm:$0xff]   ;;  %v54_v13 = vld [vmem:[%s474_s2 + $0x10] sm:$0xff]  ;;  %v42_v15 = vpack.c.bf16 %v29_v10, %v28_v9  ;;  %v53_v16 = vld [vmem:[%s474_s2 + $0x8] sm:$0xff] }
   0x6   :  { %287 = vmatprep.subr.msk.bf16.mxu0 %vm86_vm0, %v40_v4  ;;  %v94_v8 = vsel %vm86_vm0, %v40_v4, 0  ;;  %v52_v12 = vld [vmem:[%s474_s2] sm:$0xff]  ;;  %275 = vmatprep.mubr.msk.bf16.mxu0 %vm86_vm0, %v301_v11 }
   0x7   :  { %260 = vmatpush3.bf16.xpose.msra.mxu0 %v94_v8  ;;  %58 = vperm.xlu0 %299, %v52_v12   ;;  %v97_v14 = vsel %vm86_vm0, %v41_v7, 0 }
   0x8   :  { %288 = vmatprep.subr.msk.bf16.mxu0 %vm86_vm0, %v41_v7  ;;  %68 = vperm.xlu1 %300, %v54_v13  }
   0x9   :  { %12 = vsyncpa [#allocation4], 0  ;;  %v55_v17 = vld [vmem:[%s474_s2 + $0x18] sm:$0xff]  ;;  %v173_v18 = vld [vmem:[#allocation2] sm:$0x1]  ;;  %v100_v21 = vsel %vm86_vm0, %v42_v15, 0  ;;  %v179_v61 = vlaneseq }
   0xa   :  { %v30_v19 = vld [vmem:[%s472_s0 + $0x30] sm:$0xff]  ;;  %v31_v20 = vld [vmem:[%s472_s0 + $0x38] sm:$0xff]  ;;  %v32_v23 = vld [vmem:[%s472_s0 + $0x40] sm:$0xff]  ;;  %v336_v41 = vmov 0.0   ;;  %vm337_vm1 = vmmov 0   ;;  %s338_s11 = smov [#allocation3]  }
   0xb   :  { %63 = vperm.xlu0 %299, %v53_v16   ;;  %v43_v22 = vpack.c.bf16 %v31_v20, %v30_v19  ;;  %v33_v24 = vld [vmem:[%s472_s0 + $0x48] sm:$0xff]  ;;  %v34_v27 = vld [vmem:[%s472_s0 + $0x50] sm:$0xff]  ;;  %v35_v28 = vld [vmem:[%s472_s0 + $0x58] sm:$0xff]  ;;  %279 = vmatprep.subr.bf16.mxu1 %v336_v41  ;;  %v180_v62 = vshrl.u32 %v179_v61, 7  ;;  %s233_s12 = sshll.u32 %s338_s11, 4  ;;  %s234_s12 = int_to_ptr.vmem [resolvable:$true] %s233_s12 }
   0xc   :  { %73 = vperm.xlu1 %300, %v55_v17   ;;  %v44_v26 = vpack.c.bf16 %v33_v24, %v32_v23  ;;  %v45_v30 = vpack.c.bf16 %v35_v28, %v34_v27  ;;  %v36_v31 = vld [vmem:[%s472_s0 + $0x60] sm:$0xff]  ;;  %v37_v32 = vld [vmem:[%s472_s0 + $0x68] sm:$0xff]  ;;  %v38_v35 = vld [vmem:[%s472_s0 + $0x70] sm:$0xff]  ;;  %283 = vmatprep.mubr.msk.bf16.mxu1 %vm337_vm1, %v336_v41  ;;  %s311_s13 = scalar_lea.vmem %s234_s12, 16  ;;  %s315_s14 = scalar_lea.vmem %s234_s12, 32 }
   0xd   :  { %v103_v25 = vsel %vm86_vm0, %v43_v22, 0  ;;  %v46_v34 = vpack.c.bf16 %v37_v32, %v36_v31  ;;  %v39_v36 = vld [vmem:[%s472_s0 + $0x78] sm:$0xff]  ;;  %v302_v40 = vld [vmem:[%s473_s1 + $0x8] sm:$0xff]   ;;  %v170_v60 = vld [vmem:[%s475_s3] sm:$0x1]  ;;  %v181_v63 = vsub.s32 0, %v180_v62  ;;  %p312_p0 = scmp.ne.s32.totalorder %s234_s12, %s311_s13  ;;  %p316_p1 = scmp.lt.s32.totalorder %s234_s12, %s234_s12 }
   0xe   :  { %v106_v29 = vsel %vm86_vm0, %v44_v26, 0  ;;  %v109_v33 = vsel %vm86_vm0, %v45_v30, 0  ;;  %v47_v38 = vpack.c.bf16 %v39_v36, %v38_v35  ;;  %p317_p2 = scmp.lt.s32.totalorder %s315_s14, %s311_s13 }
   0xf   :  { %262 = vmatpush3.bf16.xpose.msra.mxu0 %v97_v14  ;;  %176 = vperm.xlu0 %299, %v173_v18   ;;  %v112_v37 = vsel %vm86_vm0, %v46_v34, 0 }
  0x10   :  { %289 = vmatprep.subr.msk.bf16.mxu0 %vm86_vm0, %v42_v15  ;;  %v115_v39 = vsel %vm86_vm0, %v47_v38, 0  ;;  %p318_p3 = por %p317_p2, %p316_p1 }
  0x12   :  { %p319_p4 = pnand %p318_p3, %p312_p0 }
  0x17   :  { %264 = vmatpush3.bf16.xpose.msra.mxu0 %v100_v21 }
  0x18   :  { %290 = vmatprep.subr.msk.bf16.mxu0 %vm86_vm0, %v43_v22 }
  0x1f   :  { %266 = vmatpush3.bf16.xpose.msra.mxu0 %v103_v25 }
  0x20   :  { %291 = vmatprep.subr.msk.bf16.mxu0 %vm86_vm0, %v44_v26 }
  0x27   :  { %268 = vmatpush3.bf16.xpose.msra.mxu0 %v106_v29 }
  0x28   :  { %292 = vmatprep.subr.msk.bf16.mxu0 %vm86_vm0, %v45_v30 }
  0x2f   :  { %270 = vmatpush3.bf16.xpose.msra.mxu0 %v109_v33 }
  0x30   :  { %293 = vmatprep.subr.msk.bf16.mxu0 %vm86_vm0, %v46_v34 }
  0x37   :  { %272 = vmatpush3.bf16.xpose.msra.mxu0 %v112_v37 }
  0x38   :  { %294 = vmatprep.subr.msk.bf16.mxu0 %vm86_vm0, %v47_v38 }
  0x3f   :  { %274 = vmatpush3.bf16.xpose.msra.mxu0 %v115_v39 }
  0x46   :  { %276 = vmatmul.mubr.msk.bf16.vlgmr.msra.gmra.mrb[0].mxu0 %vm86_vm0, %v302_v40 }
  0x86   :  { %v59_v43 = vpop.permute.xlu0 %58 }
  0x87   :  { %v69_v42 = vpop.permute.xlu1 %68 }
  0x8a   :  { %v64_v50 = vpop.permute.xlu0 %63 }
  0x8b   :  { %v74_v45 = vpop.permute.xlu1 %73 }
  0x8e   :  { %v177_v0 = vpop.permute.xlu0 %176 }
  0x8f   :  { %v182_v1 = vrot.slane %v177_v0, %v181_v63 }
 0x119   :  { %v277_v44 = vpop.f32.mrb[0].mxu0 }
 0x11a   :  { %v160_v46 = vadd.f32 %v277_v44, %v69_v42  ;;  %v151_v47 = vpop.f32.mrb[1].mxu0 }
 0x11b   :  { %v152_v48 = vadd.f32 %v151_v47, %v59_v43  ;;  %v278_v49 = vpop.f32.mrb[2].mxu0 }
 0x11c   :  { %303 = vtanh.f32 %v160_v46  ;;  %v163_v51 = vadd.f32 %v278_v49, %v74_v45  ;;  %v154_v52 = vpop.f32.mrb[3].mxu0 }
 0x11d   :  { %305 = vtanh.f32 %v152_v48  ;;  %v155_v53 = vadd.f32 %v154_v52, %v64_v50 }
 0x11e   :  { %307 = vtanh.f32 %v163_v51 }
 0x11f   :  { %309 = vtanh.f32 %v155_v53 }
 0x126   :  { %v304_v54 = vpop.eup %303 }
 0x127   :  { %v306_v55 = vpop.eup %305 }
 0x128   :  { %v308_v56 = vpop.eup %307 }
 0x129   :  { %v310_v57 = vpop.eup %309  ;;  %v172_v58 = vpack.c.bf16 %v308_v56, %v304_v54 }
 0x12a   :  { %v171_v59 = vpack.c.bf16 %v310_v57, %v306_v55 }
 0x12c   :  { %280 = vmatpush3.bf16.msra.mxu1 %v171_v59 }
 0x12d   :  { %281 = vmatprep.subr.bf16.mxu1 %v336_v41 }
 0x130   :  { %282 = vmatpush3.bf16.msra.mxu1 %v172_v58 }
 0x133   :  { %284 = vmatmul.mubr.msk.bf16.vlgmr.msra.gmra.mrb[0].mxu1 %vm86_vm0, %v170_v60 }
 0x206   :  { %v220_v2 = vpop.f32.mrb[0].mxu1 }
 0x207   :  { %v221_v3 = vadd.f32 %v220_v2, %v182_v1  ;;  %v285_v4 = vpop.f32.mrb[1].mxu1 }
 0x208   :  { %v223_v5 = vpop.f32.mrb[2].mxu1 }
 0x209   :  { %226 = vst [vmem:[#allocation3] sm:$0x1] %v221_v3  ;;  %v286_v6 = vpop.f32.mrb[3].mxu1 }
 0x20a   :  { %322 = shalt.err (!%p319_p4)
}
 0x20b   :  { %s323_s16 = scalar_lea.hbm %s477_s5, 16 }
 0x20c   :  { %p324_p5 = scmp.ne.s32.totalorder %s477_s5, %s323_s16  ;;  %p327_p6 = scmp.lt.u32.totalorder %s323_s16, %s477_s5 }
 0x20e   :  { %p329_p7 = pnand %p327_p6, %p324_p5 }
 0x210   :  { %332 = shalt.err (!%p329_p7)
}
 0x211   :  { %236 = dma.vmem_to_hbm [thread:$0]  %s234_s12, 16, %s477_s5, [#allocation4]  }
 0x212   :  { %333 = dma.done.wait [#allocation4], 16  }
 0x213   :  { %334 = vsyncadd [#allocation4], 4294967280 }
 0x214   :  { %240 = vsyncpa [#allocation4], 1 }

</bundles_post_ra>
